<compile_context>
chip_gen: v6e
topology: v6e:2x2x1
jax: 0.10.0
libtpu: 0.0.40
codegen_flags: <defaults>
</compile_context>

<pallas_src>
import jax
import jax.numpy as jnp
from jax.experimental import pallas as pl
from jax.experimental.pallas import tpu as pltpu


def _round_up(x, m):
    return ((x + m - 1) // m) * m


def _vmem_capacity_bytes():
    """Physical VMEM per TensorCore, with a conservative fallback."""
    try:
        info = pltpu.get_tpu_info()
        cap = getattr(info, "vmem_capacity_bytes", None)
        if cap:
            return int(cap)
    except Exception:
        pass
    return 64 * 1024 * 1024   # v7x-sized; safe (just smaller tiles) elsewhere


# --------------------------- kernels ---------------------------------------

def _ffn_kernel_fused(x_ref, w1_ref, b1_ref, w2_ref, b2_ref, o_ref):
    """Weights-resident path: whole d_ffn in one tile, no accumulator."""
    xin = x_ref[...].astype(w1_ref.dtype)
    h = jnp.dot(xin, w1_ref[...], preferred_element_type=jnp.float32)
    h = jnp.maximum(h + b1_ref[...], 0.0)               # bias + ReLU in f32
    # TODO(synk): dropout == identity (eval mode).
    y = jnp.dot(h.astype(w2_ref.dtype), w2_ref[...],
                preferred_element_type=jnp.float32)
    o_ref[...] = (y + b2_ref[...]).astype(o_ref.dtype)


def _ffn_kernel_acc(x_ref, w1_ref, b1_ref, w2_ref, b2_ref, o_ref, acc_ref):
    """Tiled-ffn path: reduce over the d_ffn grid axis into an f32 accumulator."""
    k = pl.program_id(1)

    @pl.when(k == 0)
    def _init():
        acc_ref[...] = jnp.zeros_like(acc_ref)

    xin = x_ref[...].astype(w1_ref.dtype)
    h = jnp.dot(xin, w1_ref[...], preferred_element_type=jnp.float32)
    h = jnp.maximum(h + b1_ref[...], 0.0)
    # TODO(synk): dropout == identity (eval mode).
    acc_ref[...] += jnp.dot(h.astype(w2_ref.dtype), w2_ref[...],
                            preferred_element_type=jnp.float32)

    @pl.when(k == pl.num_programs(1) - 1)
    def _finalize():
        o_ref[...] = (acc_ref[...] + b2_ref[...]).astype(o_ref.dtype)


# --------------------------- wrapper ----------------------------------------

def positionwise_feed_forward(x, w1, b1, w2, b2, *,
                              tile_rows=None, tile_ffn=None,
                              compute_dtype=jnp.bfloat16):
    """x: (batch, seq, d_model); w1: (d_model, d_ffn); w2: (d_ffn, d_model)."""
    batch, seq, d_model = x.shape
    d_ffn = w1.shape[1]
    n_rows = batch * seq

    x_isz = x.dtype.itemsize
    o_isz = x.dtype.itemsize
    w_isz = jnp.dtype(compute_dtype).itemsize

    d_model_p = _round_up(d_model, 128)
    d_ffn_128 = _round_up(d_ffn, 128)

    vmem_cap = _vmem_capacity_bytes()
    vmem_budget = vmem_cap - (8 << 20)        # headroom for compiler internals

    # dtype-aware sublane multiple for the row (second-minor) dimension.
    row_mult = {4: 8, 2: 16, 1: 32}.get(x_isz, 8)

    # Generation-aware row-tile default: big tiles on 128-MiB parts (v5e/v6e),
    # smaller on 64-MiB parts (v7x) whose faster HBM needs less reuse anyway.
    if tile_rows is None:
        tile_rows = 1024 if vmem_cap >= (96 << 20) else 512
    tile_rows = max(row_mult, _round_up(min(tile_rows, n_rows), row_mult))
    # Megacore: make sure long sequences yield >= 2 "parallel" row tiles.
    if tile_rows >= n_rows and n_rows > 512:
        tile_rows = _round_up((n_rows + 1) // 2, row_mult)

    def ws_bytes(tr, tf, nk):
        ws = 2 * tr * d_model_p * x_isz                 # x tile (double-buffered)
        ws += 2 * tr * d_model_p * o_isz                # out tile
        ws += 2 * d_model_p * tf * w_isz                # w1 tile
        ws += 2 * tf * d_model_p * w_isz                # w2 tile
        ws += 2 * 8 * (tf + d_model_p) * 4              # bias tiles (sublane-padded)
        ws += tr * tf * (4 + w_isz)                     # h (f32) + downcast copy
        if nk > 1:
            ws += tr * d_model_p * 4                    # persistent f32 accumulator
        return ws

    # ---- 1) weights-resident fast path (no accumulator, single ffn tile) ----
    use_fast = False
    sel_tr, sel_tf = tile_rows, d_ffn_128
    if tile_ffn is None or _round_up(tile_ffn, 128) >= d_ffn_128:
        tr = tile_rows
        while tr > row_mult and ws_bytes(tr, d_ffn_128, 1) > vmem_budget:
            tr = max(row_mult, _round_up(tr // 2, row_mult))
        if ws_bytes(tr, d_ffn_128, 1) <= vmem_budget:
            use_fast = True
            sel_tr, sel_tf = tr, d_ffn_128

    # ---- 2) fallback: tile d_ffn with an f32 accumulator --------------------
    if not use_fast:
        sel_tf = _round_up(tile_ffn, 128) if tile_ffn is not None else 1024
        sel_tf = min(sel_tf, d_ffn_128)
        sel_tr = tile_rows
        while sel_tf > 128 and ws_bytes(sel_tr, sel_tf, 2) > vmem_budget:
            sel_tf = max(128, _round_up(sel_tf // 2, 128))
        while sel_tr > row_mult and ws_bytes(sel_tr, sel_tf, 2) > vmem_budget:
            sel_tr = max(row_mult, _round_up(sel_tr // 2, row_mult))

    tile_rows, tile_ffn = sel_tr, sel_tf
    d_ffn_p = _round_up(d_ffn, tile_ffn)
    k_steps = d_ffn_p // tile_ffn
    n_rows_p = _round_up(n_rows, tile_rows)
    num_row_tiles = n_rows_p // tile_rows

    # ---- padding (guarded: no-op pads are skipped) ---------------------------
    def _pad2(a, rows, cols):
        pr, pc = rows - a.shape[0], cols - a.shape[1]
        if pr or pc:
            a = jnp.pad(a, ((0, pr), (0, pc)))
        return a

    w1c = w1 if w1.dtype == compute_dtype else w1.astype(compute_dtype)
    w2c = w2 if w2.dtype == compute_dtype else w2.astype(compute_dtype)
    b1c = b1.reshape(1, d_ffn).astype(jnp.float32)
    b2c = b2.reshape(1, d_model).astype(jnp.float32)

    x2d = _pad2(x.reshape(n_rows, d_model), n_rows_p, d_model_p)
    w1p = _pad2(w1c, d_model_p, d_ffn_p)
    w2p = _pad2(w2c, d_ffn_p, d_model_p)
    b1p = _pad2(b1c, 1, d_ffn_p)
    b2p = _pad2(b2c, 1, d_model_p)

    # ---- VMEM budget & scheduler hint ----------------------------------------
    ws = ws_bytes(tile_rows, tile_ffn, k_steps)
    vmem_limit = int(min(vmem_cap - (4 << 20), max(32 << 20, int(ws * 1.4))))

    weight_bytes = 2 * d_model_p * d_ffn_p * w_isz
    weight_reads = 1 if k_steps == 1 else num_row_tiles   # resident vs re-streamed
    cost = pl.CostEstimate(
        flops=4 * n_rows_p * d_model_p * d_ffn_p,
        transcendentals=0,
        bytes_accessed=int(n_rows_p * d_model_p * (x_isz + o_isz)
                           + weight_reads * weight_bytes
                           + (d_ffn_p + d_model_p) * 4),
    )

    # ---- grid / specs ----------------------------------------------------------
    if k_steps == 1:
        kernel = _ffn_kernel_fused
        grid = (num_row_tiles,)
        in_specs = [
            pl.BlockSpec((tile_rows, d_model_p), lambda i: (i, 0)),
            pl.BlockSpec((d_model_p, tile_ffn), lambda i: (0, 0)),   # resident
            pl.BlockSpec((1, tile_ffn), lambda i: (0, 0)),           # resident
            pl.BlockSpec((tile_ffn, d_model_p), lambda i: (0, 0)),   # resident
            pl.BlockSpec((1, d_model_p), lambda i: (0, 0)),          # resident
        ]
        out_specs = pl.BlockSpec((tile_rows, d_model_p), lambda i: (i, 0))
        scratch_shapes = []
        dims = ("parallel",)
    else:
        kernel = _ffn_kernel_acc
        grid = (num_row_tiles, k_steps)
        in_specs = [
            pl.BlockSpec((tile_rows, d_model_p), lambda i, k: (i, 0)),
            pl.BlockSpec((d_model_p, tile_ffn), lambda i, k: (0, k)),
            pl.BlockSpec((1, tile_ffn), lambda i, k: (0, k)),
            pl.BlockSpec((tile_ffn, d_model_p), lambda i, k: (k, 0)),
            pl.BlockSpec((1, d_model_p), lambda i, k: (0, 0)),
        ]
        out_specs = pl.BlockSpec((tile_rows, d_model_p), lambda i, k: (i, 0))
        scratch_shapes = [pltpu.VMEM((tile_rows, d_model_p), jnp.float32)]
        dims = ("parallel", "arbitrary")

    out2d = pl.pallas_call(
        kernel,
        out_shape=jax.ShapeDtypeStruct((n_rows_p, d_model_p), x.dtype),
        grid_spec=pltpu.PrefetchScalarGridSpec(
            num_scalar_prefetch=0,
            grid=grid,
            in_specs=in_specs,
            out_specs=out_specs,
            scratch_shapes=scratch_shapes,
        ),
        compiler_params=pltpu.CompilerParams(
            dimension_semantics=dims,
            vmem_limit_bytes=vmem_limit,
        ),
        cost_estimate=cost,
    )(x2d, w1p, b1p, w2p, b2p)

    if n_rows_p != n_rows or d_model_p != d_model:
        out2d = out2d[:n_rows, :d_model]
    return out2d.reshape(batch, seq, d_model)


def _init_linear_params(key, in_features, out_features, dtype=jnp.float32):
    """PyTorch-style Linear init: U(-1/sqrt(fan_in), +1/sqrt(fan_in)).
    Weight returned already transposed to (in_features, out_features)."""
    kw, kb = jax.random.split(key)
    bound = 1.0 / (in_features ** 0.5)
    w = jax.random.uniform(kw, (in_features, out_features), dtype,
                           minval=-bound, maxval=bound)
    b = jax.random.uniform(kb, (out_features,), dtype,
                           minval=-bound, maxval=bound)
    return w, b


if __name__ == "__main__":
    d_model = 8
    d_ffn = d_model * 4   # 32
    batch, seq = 2, 8

    key = jax.random.PRNGKey(0)
    kx, k1, k2 = jax.random.split(key, 3)

    x = jax.random.normal(kx, (batch, seq, d_model), dtype=jnp.float32)
    w1, b1 = _init_linear_params(k1, d_model, d_ffn)
    w2, b2 = _init_linear_params(k2, d_ffn, d_model)

    fn = jax.jit(positionwise_feed_forward)
    y = jax.block_until_ready(fn(x, w1, b1, w2, b2))

    # References: exact f32 FFN, and the kernel's mixed-precision semantics
    # (bf16 matmul operands, f32 accumulate, f32 bias/ReLU).
    cd = jnp.bfloat16
    ref_f32 = jnp.maximum(x @ w1 + b1, 0.0) @ w2 + b2
    h_ref = jnp.maximum(
        jnp.dot(x.reshape(-1, d_model).astype(cd), w1.astype(cd),
                preferred_element_type=jnp.float32) + b1, 0.0)
    ref_bf16 = (jnp.dot(h_ref.astype(cd), w2.astype(cd),
                        preferred_element_type=jnp.float32) + b2
                ).reshape(x.shape)

    assert y.shape == (batch, seq, d_model)
    assert jnp.allclose(y, ref_bf16, atol=1e-4, rtol=1e-4), \
        float(jnp.max(jnp.abs(y - ref_bf16)))
    assert jnp.allclose(y, ref_f32, atol=6e-2, rtol=6e-2), \
        float(jnp.max(jnp.abs(y - ref_f32)))

    print("KERNEL_OK")
</pallas_src>

<mosaic_0001>
module attributes {stable_mosaic.version = 11 : i64} {
  func.func @_ffn_kernel_fused(%arg0: i32, %arg1: memref<16x128xf32, #tpu.memory_space<vmem>>, %arg2: memref<128x128xbf16, #tpu.memory_space<vmem>>, %arg3: memref<1x128xf32, #tpu.memory_space<vmem>>, %arg4: memref<128x128xbf16, #tpu.memory_space<vmem>>, %arg5: memref<1x128xf32, #tpu.memory_space<vmem>>, %arg6: memref<16x128xf32, #tpu.memory_space<vmem>>) attributes {dimension_semantics = [#tpu.dimension_semantics<parallel>], iteration_bounds = array<i64: 1>, scalar_prefetch = 0 : i64, scratch_operands = 0 : i64, tpu.core_type = #tpu.core_type<tc>, window_params = [{transform_indices = @transform_0, window_bounds = array<i64: 16, 128>}, {pipeline_mode = #tpu.pipeline_mode<synchronous>, transform_indices = @transform_1, window_bounds = array<i64: 128, 128>}, {pipeline_mode = #tpu.pipeline_mode<synchronous>, transform_indices = @transform_2, window_bounds = array<i64: 1, 128>}, {pipeline_mode = #tpu.pipeline_mode<synchronous>, transform_indices = @transform_3, window_bounds = array<i64: 128, 128>}, {pipeline_mode = #tpu.pipeline_mode<synchronous>, transform_indices = @transform_4, window_bounds = array<i64: 1, 128>}, {transform_indices = @transform_5, window_bounds = array<i64: 16, 128>}]} {
    %c0 = arith.constant 0 : index
    %c0_0 = arith.constant 0 : index
    %0 = vector.load %arg1[%c0, %c0_0] : memref<16x128xf32, #tpu.memory_space<vmem>>, vector<16x128xf32>
    %1 = arith.truncf %0 : vector<16x128xf32> to vector<16x128xbf16>
    %c0_1 = arith.constant 0 : index
    %c0_2 = arith.constant 0 : index
    %2 = vector.load %arg2[%c0_1, %c0_2] : memref<128x128xbf16, #tpu.memory_space<vmem>>, vector<128x128xbf16>
    %cst = arith.constant dense<0.000000e+00> : vector<16x128xf32>
    %3 = tpu.matmul %1, %2, %cst {dimension_numbers = #tpu.dot_dimension_numbers<[1], [0], [0], [1], [0, 0, 1, 1], [], []>} : vector<16x128xbf16>, vector<128x128xbf16>, vector<16x128xf32> -> vector<16x128xf32>
    %c0_3 = arith.constant 0 : index
    %c0_4 = arith.constant 0 : index
    %4 = vector.load %arg3[%c0_3, %c0_4] : memref<1x128xf32, #tpu.memory_space<vmem>>, vector<1x128xf32>
    %5 = vector.broadcast %4 : vector<1x128xf32> to vector<16x128xf32>
    %6 = arith.addf %3, %5 : vector<16x128xf32>
    %cst_5 = arith.constant 0.000000e+00 : f32
    %7 = vector.broadcast %cst_5 : f32 to vector<16x128xf32>
    %8 = arith.maximumf %6, %7 : vector<16x128xf32>
    %9 = arith.truncf %8 : vector<16x128xf32> to vector<16x128xbf16>
    %c0_6 = arith.constant 0 : index
    %c0_7 = arith.constant 0 : index
    %10 = vector.load %arg4[%c0_6, %c0_7] : memref<128x128xbf16, #tpu.memory_space<vmem>>, vector<128x128xbf16>
    %cst_8 = arith.constant dense<0.000000e+00> : vector<16x128xf32>
    %11 = tpu.matmul %9, %10, %cst_8 {dimension_numbers = #tpu.dot_dimension_numbers<[1], [0], [0], [1], [0, 0, 1, 1], [], []>} : vector<16x128xbf16>, vector<128x128xbf16>, vector<16x128xf32> -> vector<16x128xf32>
    %c0_9 = arith.constant 0 : index
    %c0_10 = arith.constant 0 : index
    %12 = vector.load %arg5[%c0_9, %c0_10] : memref<1x128xf32, #tpu.memory_space<vmem>>, vector<1x128xf32>
    %13 = vector.broadcast %12 : vector<1x128xf32> to vector<16x128xf32>
    %14 = arith.addf %11, %13 : vector<16x128xf32>
    %c0_11 = arith.constant 0 : index
    %c0_12 = arith.constant 0 : index
    %15 = vector.load %arg6[%c0_11, %c0_12] : memref<16x128xf32, #tpu.memory_space<vmem>>, vector<16x128xf32>
    tpu.vector_store %arg6[%c0_11, %c0_12], %14 {strides = array<i32>} : memref<16x128xf32, #tpu.memory_space<vmem>>, vector<16x128xf32>,
    return
  }
  func.func @transform_0(%arg0: i32) -> (i32, i32) {
    %c0_i32 = arith.constant 0 : i32
    %c0_i32_0 = arith.constant 0 : i32
    return %arg0, %c0_i32 : i32, i32
  }
  func.func @transform_1(%arg0: i32) -> (i32, i32) {
    %c0_i32 = arith.constant 0 : i32
    %c0_i32_0 = arith.constant 0 : i32
    %c0_i32_1 = arith.constant 0 : i32
    return %c0_i32, %c0_i32_0 : i32, i32
  }
  func.func @transform_2(%arg0: i32) -> (i32, i32) {
    %c0_i32 = arith.constant 0 : i32
    %c0_i32_0 = arith.constant 0 : i32
    %c0_i32_1 = arith.constant 0 : i32
    return %c0_i32, %c0_i32_0 : i32, i32
  }
  func.func @transform_3(%arg0: i32) -> (i32, i32) {
    %c0_i32 = arith.constant 0 : i32
    %c0_i32_0 = arith.constant 0 : i32
    %c0_i32_1 = arith.constant 0 : i32
    return %c0_i32, %c0_i32_0 : i32, i32
  }
  func.func @transform_4(%arg0: i32) -> (i32, i32) {
    %c0_i32 = arith.constant 0 : i32
    %c0_i32_0 = arith.constant 0 : i32
    %c0_i32_1 = arith.constant 0 : i32
    return %c0_i32, %c0_i32_0 : i32, i32
  }
  func.func @transform_5(%arg0: i32) -> (i32, i32) {
    %c0_i32 = arith.constant 0 : i32
    %c0_i32_0 = arith.constant 0 : i32
    return %arg0, %c0_i32 : i32, i32
  }
}

</mosaic_0001>

<bundles_post_ra>
// kernel: positionwise_feed_forward.1
= control target key start
LH: loop header
LB: loop body
LE: loop exit
PB: predicated region body
PF: predicated region fallthrough
CT: control target
= control target key end

     0   :  { %v351_v0 = vmov 0.0   ;;  %vm352_vm0 = vmmov 0   ;;  %s449_s1 = inlined_call_operand.vmem [shape: bf16[128,128], index: 1, kind: input, shape index: {}]   ;;  %s450_s3 = inlined_call_operand.vmem [shape: bf16[128,128], index: 3, kind: input, shape index: {}]   ;;  %s451_s0 = inlined_call_operand.vmem [shape: f32[16,128], index: 0, kind: input, shape index: {}]   ;;  %s452_s2 = inlined_call_operand.vmem [shape: f32[1,128], index: 2, kind: input, shape index: {}]   ;;  %s453_s4 = inlined_call_operand.vmem [shape: f32[1,128], index: 4, kind: input, shape index: {}]   ;;  %s454_s5 = inlined_call_operand.vmem [shape: f32[16,128], index: 5, kind: output, shape index: {}]  }
   0x1   :  { %293 = vmatprep.subr.bf16.mxu0 %v351_v0  ;;  %v335_v1 = vld [vmem:[%s449_s1 + $0x38] sm:$0xff]   ;;  %309 = vmatprep.mubr.msk.bf16.mxu0 %vm352_vm0, %v351_v0  ;;  %v336_v2 = vld [vmem:[%s449_s1 + $0x30] sm:$0xff]   ;;  %v337_v3 = vld [vmem:[%s449_s1 + $0x28] sm:$0xff]  }
   0x2   :  { %313 = vmatprep.subr.bf16.mxu1 %v351_v0  ;;  %329 = vmatprep.mubr.msk.bf16.mxu1 %vm352_vm0, %v351_v0  ;;  %v343_v4 = vld [vmem:[%s450_s3 + $0x38] sm:$0xff]   ;;  %v338_v5 = vld [vmem:[%s449_s1 + $0x20] sm:$0xff]   ;;  %v344_v6 = vld [vmem:[%s450_s3 + $0x30] sm:$0xff]  }
   0x3   :  { %294 = vmatpush3.bf16.msra.mxu0 %v335_v1  ;;  %314 = vmatpush3.bf16.msra.mxu1 %v343_v4  ;;  %v339_v7 = vld [vmem:[%s449_s1 + $0x18] sm:$0xff]   ;;  %v345_v8 = vld [vmem:[%s450_s3 + $0x28] sm:$0xff]   ;;  %v340_v9 = vld [vmem:[%s449_s1 + $0x10] sm:$0xff]  }
   0x4   :  { %295 = vmatprep.subr.bf16.mxu0 %v351_v0  ;;  %315 = vmatprep.subr.bf16.mxu1 %v351_v0  ;;  %v346_v10 = vld [vmem:[%s450_s3 + $0x20] sm:$0xff]   ;;  %v341_v11 = vld [vmem:[%s449_s1 + $0x8] sm:$0xff]   ;;  %v347_v12 = vld [vmem:[%s450_s3 + $0x18] sm:$0xff]  }
   0x5   :  { %v342_v13 = vld [vmem:[%s449_s1] sm:$0xff]   ;;  %v22_v15 = vld [vmem:[%s451_s0 + $0x8] sm:$0xff]  ;;  %v348_v17 = vld [vmem:[%s450_s3 + $0x10] sm:$0xff]  }
   0x6   :  { %v21_v14 = vld [vmem:[%s451_s0] sm:$0xff]  ;;  %v349_v18 = vld [vmem:[%s450_s3 + $0x8] sm:$0xff]  }
   0x7   :  { %296 = vmatpush3.bf16.msra.mxu0 %v336_v2  ;;  %316 = vmatpush3.bf16.msra.mxu1 %v344_v6  ;;  %v23_v16 = vpack.c.bf16 %v22_v15, %v21_v14  ;;  %v350_v19 = vld [vmem:[%s450_s3] sm:$0xff]  }
   0x8   :  { %297 = vmatprep.subr.bf16.mxu0 %v351_v0  ;;  %317 = vmatprep.subr.bf16.mxu1 %v351_v0  ;;  %v257_v20 = vld [vmem:[%s452_s2] ss:$0 sm:$0xff] }
   0x9   :  { %v266_v30 = vld [vmem:[%s453_s4] ss:$0 sm:$0xff] }
   0xb   :  { %298 = vmatpush3.bf16.msra.mxu0 %v337_v3  ;;  %318 = vmatpush3.bf16.msra.mxu1 %v345_v8 }
   0xc   :  { %299 = vmatprep.subr.bf16.mxu0 %v351_v0  ;;  %319 = vmatprep.subr.bf16.mxu1 %v351_v0 }
   0xf   :  { %300 = vmatpush3.bf16.msra.mxu0 %v338_v5  ;;  %320 = vmatpush3.bf16.msra.mxu1 %v346_v10 }
  0x10   :  { %301 = vmatprep.subr.bf16.mxu0 %v351_v0  ;;  %321 = vmatprep.subr.bf16.mxu1 %v351_v0 }
  0x13   :  { %302 = vmatpush3.bf16.msra.mxu0 %v339_v7  ;;  %322 = vmatpush3.bf16.msra.mxu1 %v347_v12 }
  0x14   :  { %303 = vmatprep.subr.bf16.mxu0 %v351_v0  ;;  %323 = vmatprep.subr.bf16.mxu1 %v351_v0 }
  0x17   :  { %304 = vmatpush3.bf16.msra.mxu0 %v340_v9  ;;  %324 = vmatpush3.bf16.msra.mxu1 %v348_v17 }
  0x18   :  { %305 = vmatprep.subr.bf16.mxu0 %v351_v0  ;;  %325 = vmatprep.subr.bf16.mxu1 %v351_v0 }
  0x1b   :  { %306 = vmatpush3.bf16.msra.mxu0 %v341_v11  ;;  %326 = vmatpush3.bf16.msra.mxu1 %v349_v18 }
  0x1c   :  { %307 = vmatprep.subr.bf16.mxu0 %v351_v0  ;;  %327 = vmatprep.subr.bf16.mxu1 %v351_v0 }
  0x1f   :  { %308 = vmatpush3.bf16.msra.mxu0 %v342_v13  ;;  %328 = vmatpush3.bf16.msra.mxu1 %v350_v19 }
  0x22   :  { %310 = vmatmul.mubr.bf16.vlgmr.msra.gmra.mxu0 %v23_v16 }
  0xe2   :  { %v129_v21 = vpop.f32.mrf.mxu0 }
  0xe3   :  { %v130_v23 = vadd.f32 %v257_v20, %v129_v21 }
  0xe4   :  { %v311_v22 = vpop.f32.mrf.mxu0 }
  0xe5   :  { %v136_v27 = vmax.f32 %v130_v23, 0.0 }
  0xe6   :  { %v132_v24 = vpop.f32.mrf.mxu0 }
  0xe7   :  { %v133_v25 = vadd.f32 %v257_v20, %v132_v24 }
  0xe8   :  { %v312_v26 = vpop.f32.mrf.mxu0 }
  0xe9   :  { %v137_v28 = vmax.f32 %v133_v25, 0.0 }
  0xeb   :  { %v138_v29 = vpack.c.bf16 %v137_v28, %v136_v27 }
  0xed   :  { %330 = vmatmul.mubr.bf16.vlgmr.msra.gmra.mxu1 %v138_v29 }
 0x1ad   :  { %v244_v31 = vpop.f32.mrf.mxu1 }
 0x1ae   :  { %v245_v32 = vadd.f32 %v266_v30, %v244_v31 }
 0x1af   :  { %v331_v33 = vpop.f32.mrf.mxu1 }
 0x1b0   :  { %251 = vst [vmem:[%s454_s5] sm:$0xff] %v245_v32 }
 0x1b1   :  { %v247_v34 = vpop.f32.mrf.mxu1 }
 0x1b2   :  { %v248_v35 = vadd.f32 %v266_v30, %v247_v34 }
 0x1b3   :  { %v332_v36 = vpop.f32.mrf.mxu1 }
 0x1b4   :  { %252 = vst [vmem:[%s454_s5 + $0x8] sm:$0xff] %v248_v35 }

</bundles_post_ra>
